<compile_context>
chip_gen: v7x
topology: tpu7x:2x2x1
jax: 0.10.0
libtpu: 0.0.40
codegen_flags: <defaults>
</compile_context>

<pallas_src>
import functools
import itertools

import numpy as np
import jax
import jax.numpy as jnp
from jax import lax
from jax.experimental import pallas as pl
from jax.experimental.pallas import tpu as pltpu


# ---------------------------------------------------------------------------
# Constant (buffer) construction — pure glue, mirrors the PyTorch __init__.
# ---------------------------------------------------------------------------
def _build_output_control_points(num_control_points, margins):
    margin_x, margin_y = margins
    n = num_control_points // 2
    ctrl_x = np.linspace(margin_x, 1.0 - margin_x, n)
    top = np.stack([ctrl_x, np.ones(n) * margin_y], axis=1)
    bot = np.stack([ctrl_x, np.ones(n) * (1.0 - margin_y)], axis=1)
    return np.concatenate([top, bot], axis=0).astype(np.float64)


def _compute_partial_repr(input_points, control_points):
    diff = input_points[:, None, :] - control_points[None, :, :]
    dist = (diff * diff).sum(-1)
    rep = np.zeros_like(dist)
    np.multiply(0.5 * dist, np.log(dist, where=dist > 0, out=np.zeros_like(dist)),
                out=rep, where=dist > 0)
    return rep


def make_tps_constants(output_image_size=(8, 16), num_control_points=20,
                       margins=(0.05, 0.05)):
    """Returns (A_T, target_control_points), A_T = (target_coordinate_repr @ inverse_kernel)^T."""
    H, W = output_image_size
    N = num_control_points
    tcp = _build_output_control_points(N, margins)                  # (N, 2)

    fk = np.zeros((N + 3, N + 3), np.float64)
    fk[:N, :N] = _compute_partial_repr(tcp, tcp)
    fk[:N, N] = 1.0          # column -3
    fk[N, :N] = 1.0          # row    -3
    fk[:N, N + 1:] = tcp     # last two columns
    fk[N + 1:, :N] = tcp.T   # last two rows
    inverse_kernel = np.linalg.inv(fk)                               # (N+3, N+3)

    HW = H * W
    tgt = np.array(list(itertools.product(range(H), range(W))), np.float64)  # (HW, 2) as (y, x)
    Y = tgt[:, 0:1] / (H - 1)
    X = tgt[:, 1:2] / (W - 1)
    tgt_xy = np.concatenate([X, Y], axis=1)                                   # (HW, 2) as (x, y)
    pr = _compute_partial_repr(tgt_xy, tcp)                                   # (HW, N)
    repr_full = np.concatenate([pr, np.ones((HW, 1)), tgt_xy], axis=1)        # (HW, N+3)

    # Constant fold: src = repr @ (invk @ Y) == (repr @ invk) @ Y  (exact, associativity).
    A = repr_full @ inverse_kernel                                            # (HW, N+3)
    return (jnp.asarray(A.T, jnp.float32),           # (N+3, HW)
            jnp.asarray(tcp, jnp.float32))


# ---------------------------------------------------------------------------
# Pallas kernel: one (batch item, HW tile) per grid step, lane-dense on HW.
# ---------------------------------------------------------------------------
def tps_kernel(yT_ref, aT_ref, img_ref, out_ref, *, Hin, Win, C):
    """yT_ref : (1, 2, N+3)      transposed [source_ctrl_pts ; 0-pad] for this batch item
       aT_ref : (N+3, HWt)       (target_coordinate_repr @ inverse_kernel)^T, current HW tile
       img_ref: (1, C*Hin, Win)  input image, rows = (c, y) flattened
       out_ref: (1, C, HWt)
    """
    HWt = aT_ref.shape[-1]

    # Source coordinates for this tile: srcT = Y^T @ A^T -> (2, HWt), lane-dense on HW.
    # Pinned to HIGHEST precision: gx/gy feed floor(); this matmul is tiny (2 MXU rows).
    srcT = jnp.dot(yT_ref[0], aT_ref[...],
                   precision=lax.Precision.HIGHEST,
                   preferred_element_type=jnp.float32)               # (2, HWt)

    # torch: clamp(grid,0,1) -> 2g-1 -> grid_sample(align_corners=True)
    #        == clamp(src,0,1) * (size-1)   (grid never leaves [-1,1], so no zero-padding path)
    srcT = jnp.clip(srcT, 0.0, 1.0)
    gx = srcT[0:1, :] * (Win - 1)                                    # (1, HWt)
    gy = srcT[1:2, :] * (Hin - 1)                                    # (1, HWt)

    x0 = jnp.floor(gx)
    y0 = jnp.floor(gy)
    fx = gx - x0
    fy = gy - y0
    x0i = x0.astype(jnp.int32)
    y0i = y0.astype(jnp.int32)
    x1i = jnp.minimum(x0i + 1, Win - 1)
    y1i = jnp.minimum(y0i + 1, Hin - 1)

    jx = lax.broadcasted_iota(jnp.int32, (Win, HWt), 0)              # (Win, HWt)
    jy = lax.broadcasted_iota(jnp.int32, (Hin, HWt), 0)              # (Hin, HWt)

    # Sparse bilinear weights as dense, already-transposed matrices.  Weight math kept in f32
    # (cheap; v5e has no bf16 VPU) — cast only at the MXU boundary below.
    wxT = (jnp.where(jx == x0i, 1.0 - fx, 0.0)
           + jnp.where(jx == x1i, fx, 0.0))                          # (Win, HWt)
    wyT = (jnp.where(jy == y0i, 1.0 - fy, 0.0)
           + jnp.where(jy == y1i, fy, 0.0))                          # (Hin, HWt)

    # Stage 1: single MXU contraction over Win with C*Hin rows (bf16 fast path if img is bf16).
    T = jnp.dot(img_ref[0], wxT.astype(img_ref.dtype),
                preferred_element_type=jnp.float32)                  # (C*Hin, HWt)

    # Stage 2: per-lane reduction over Hin (VALU multiply + sublane reduce -> XLU slot).
    o = jnp.sum(T.reshape(C, Hin, HWt) * wyT[None, :, :], axis=1)    # (C, HWt)

    out_ref[0] = o.astype(out_ref.dtype)


def _pick_hw_tile(HW, cap=1024):
    """Lane-dense (multiple of 128) HW tile, <= cap, chosen to minimize padding."""
    hw128 = ((HW + 127) // 128) * 128
    if hw128 <= cap:
        return hw128
    best, best_pad = cap, (-HW) % cap
    for t in range(cap, 127, -128):
        pad = (-HW) % t
        if pad < best_pad:
            best, best_pad = t, pad
            if pad == 0:
                break
    return best


def tps_transform(img, source_control_points, repr_invk_T, output_image_size,
                  hw_tile_cap=1024):
    B, C, Hin, Win = img.shape
    Hout, Wout = output_image_size
    HW = Hout * Wout
    Np3 = repr_invk_T.shape[0]

    HWt = _pick_hw_tile(HW, hw_tile_cap)
    n_hw = -(-HW // HWt)
    HWp = n_hw * HWt

    aT = repr_invk_T
    if HWp != HW:
        # Padded lanes compute src=(0,0) (sample pixel (0,0)); sliced off below.
        aT = jnp.pad(aT, ((0, 0), (0, HWp - HW)))

    # Y = cat([scp, padding_matrix]) transposed to (B, 2, N+3) — wrapper-side layout plumbing.
    YT = jnp.concatenate(
        [source_control_points.astype(jnp.float32),
         jnp.zeros((B, 3, 2), jnp.float32)], axis=1).transpose(0, 2, 1)       # (B, 2, N+3)

    # Rows = (c, y) flattened so stage-1 is one (C*Hin, Win) @ (Win, HWt) matmul.
    img2 = img.reshape(B, C * Hin, Win)

    # VMEM budget per step (double-buffered by the pipeline): aT tile + img + out blocks are
    # tens-to-hundreds of KB — far below the default scoped limit and v7x's 64 MiB.
    kernel = functools.partial(tps_kernel, Hin=Hin, Win=Win, C=C)
    out = pl.pallas_call(
        kernel,
        out_shape=jax.ShapeDtypeStruct((B, C, HWp), img.dtype),
        grid_spec=pltpu.PrefetchScalarGridSpec(
            num_scalar_prefetch=0,
            grid=(B, n_hw),                     # hw innermost: img block resident across tiles
            in_specs=[
                pl.BlockSpec((1, 2, Np3), lambda b, h: (b, 0, 0)),
                pl.BlockSpec((Np3, HWt), lambda b, h: (0, h)),
                pl.BlockSpec((1, C * Hin, Win), lambda b, h: (b, 0, 0)),
            ],
            out_specs=pl.BlockSpec((1, C, HWt), lambda b, h: (b, 0, h)),
        ),
        compiler_params=pltpu.CompilerParams(
            dimension_semantics=("parallel", "arbitrary")),  # distinct output block per step
    )(YT, aT, img2)
    return out[:, :, :HW].reshape(B, C, Hout, Wout)


# ---------------------------------------------------------------------------
# Pure-JAX reference (same folded constant A — exact refactor of the torch matmuls —
# plus F.grid_sample bilinear, align_corners=True semantics) for correctness check.
# ---------------------------------------------------------------------------
def tps_reference(img, scp, repr_invk_T, output_image_size):
    B, C, Hin, Win = img.shape
    Hout, Wout = output_image_size
    Y = jnp.concatenate([scp.astype(jnp.float32),
                         jnp.zeros((B, 3, 2), jnp.float32)], axis=1)          # (B, N+3, 2)
    src = jnp.einsum('jp,bjk->bpk', repr_invk_T, Y,
                     precision=lax.Precision.HIGHEST)                         # (B, HW, 2)
    grid = jnp.clip(src, 0.0, 1.0)
    gx = grid[..., 0] * (Win - 1)
    gy = grid[..., 1] * (Hin - 1)
    x0 = jnp.floor(gx).astype(jnp.int32)
    y0 = jnp.floor(gy).astype(jnp.int32)
    x1 = jnp.minimum(x0 + 1, Win - 1)
    y1 = jnp.minimum(y0 + 1, Hin - 1)
    fx = (gx - x0.astype(gx.dtype))[:, None, :]
    fy = (gy - y0.astype(gy.dtype))[:, None, :]

    def gather(iy, ix):
        return jax.vmap(lambda im, yy, xx: im[:, yy, xx])(img, iy, ix)        # (B, C, HW)

    v00 = gather(y0, x0)
    v01 = gather(y0, x1)
    v10 = gather(y1, x0)
    v11 = gather(y1, x1)
    out = (v00 * (1 - fx) * (1 - fy) + v01 * fx * (1 - fy)
           + v10 * (1 - fx) * fy + v11 * fx * fy)
    return out.reshape(B, C, Hout, Wout)


if __name__ == "__main__":
    B, C, Hin, Win = 2, 4, 16, 16
    output_image_size = (8, 16)        # H_out * W_out = 128 (already lane-dense)
    num_control_points = 20
    margins = (0.05, 0.05)

    repr_invk_T, target_control_points = make_tps_constants(
        output_image_size, num_control_points, margins)

    key = jax.random.PRNGKey(0)
    k_img, k_pts = jax.random.split(key)
    img = jax.random.normal(k_img, (B, C, Hin, Win), jnp.float32)
    # source control points: canonical target points plus a small deterministic jitter
    jitter = 0.05 * jax.random.normal(k_pts, (B, num_control_points, 2), jnp.float32)
    source_control_points = jnp.clip(
        target_control_points[None, :, :] + jitter, 0.0, 1.0)

    out = tps_transform(img, source_control_points, repr_invk_T, output_image_size)
    out = jax.block_until_ready(out)

    ref = tps_reference(img, source_control_points, repr_invk_T, output_image_size)
    np.testing.assert_allclose(np.asarray(out), np.asarray(ref),
                               rtol=1e-4, atol=5e-4)
    assert out.shape == (B, C, output_image_size[0], output_image_size[1])
    print("KERNEL_OK")
</pallas_src>

<mosaic_0001>
module attributes {stable_mosaic.version = 11 : i64} {
  func.func @tps_kernel(%arg0: i32, %arg1: i32, %arg2: memref<1x2x23xf32, #tpu.memory_space<vmem>>, %arg3: memref<23x128xf32, #tpu.memory_space<vmem>>, %arg4: memref<1x64x16xf32, #tpu.memory_space<vmem>>, %arg5: memref<1x4x128xf32, #tpu.memory_space<vmem>>) attributes {dimension_semantics = [#tpu.dimension_semantics<parallel>, #tpu.dimension_semantics<arbitrary>], iteration_bounds = array<i64: 2, 1>, scalar_prefetch = 0 : i64, scratch_operands = 0 : i64, tpu.core_type = #tpu.core_type<tc>, window_params = [{transform_indices = @transform_0, window_bounds = array<i64: 1, 2, 23>}, {transform_indices = @transform_1, window_bounds = array<i64: 23, 128>}, {transform_indices = @transform_2, window_bounds = array<i64: 1, 64, 16>}, {transform_indices = @transform_3, window_bounds = array<i64: 1, 4, 128>}]} {
    %c0 = arith.constant 0 : index
    %c0_0 = arith.constant 0 : index
    %c0_1 = arith.constant 0 : index
    %0 = vector.load %arg2[%c0, %c0_0, %c0_1] : memref<1x2x23xf32, #tpu.memory_space<vmem>>, vector<1x2x23xf32>
    %1 = vector.shape_cast %0 : vector<1x2x23xf32> to vector<2x23xf32>
    %c0_2 = arith.constant 0 : index
    %c0_3 = arith.constant 0 : index
    %2 = vector.load %arg3[%c0_2, %c0_3] : memref<23x128xf32, #tpu.memory_space<vmem>>, vector<23x128xf32>
    %cst = arith.constant dense<0.000000e+00> : vector<2x128xf32>
    %3 = tpu.matmul %1, %2, %cst {dimension_numbers = #tpu.dot_dimension_numbers<[1], [0], [0], [1], [0, 0, 1, 1], [], []>, precision = #tpu.contract_precision<fp32>} : vector<2x23xf32>, vector<23x128xf32>, vector<2x128xf32> -> vector<2x128xf32>
    %cst_4 = arith.constant 0.000000e+00 : f32
    %cst_5 = arith.constant 1.000000e+00 : f32
    %4 = vector.broadcast %cst_4 : f32 to vector<2x128xf32>
    %5 = arith.maximumf %4, %3 : vector<2x128xf32>
    %6 = vector.broadcast %cst_5 : f32 to vector<2x128xf32>
    %7 = arith.minimumf %6, %5 : vector<2x128xf32>
    %8 = vector.extract_strided_slice %7 {offsets = [0, 0], sizes = [1, 128], strides = [1, 1]} : vector<2x128xf32> to vector<1x128xf32>
    %cst_6 = arith.constant 1.500000e+01 : f32
    %9 = vector.broadcast %cst_6 : f32 to vector<1x128xf32>
    %10 = arith.mulf %8, %9 : vector<1x128xf32>
    %11 = vector.extract_strided_slice %7 {offsets = [1, 0], sizes = [1, 128], strides = [1, 1]} : vector<2x128xf32> to vector<1x128xf32>
    %cst_7 = arith.constant 1.500000e+01 : f32
    %12 = vector.broadcast %cst_7 : f32 to vector<1x128xf32>
    %13 = arith.mulf %11, %12 : vector<1x128xf32>
    %14 = math.floor %10 : vector<1x128xf32>
    %15 = math.floor %13 : vector<1x128xf32>
    %16 = arith.subf %10, %14 : vector<1x128xf32>
    %17 = arith.subf %13, %15 : vector<1x128xf32>
    %18 = arith.fptosi %14 : vector<1x128xf32> to vector<1x128xi32>
    %19 = arith.fptosi %15 : vector<1x128xf32> to vector<1x128xi32>
    %c1_i32 = arith.constant 1 : i32
    %20 = vector.broadcast %c1_i32 : i32 to vector<1x128xi32>
    %21 = arith.addi %18, %20 : vector<1x128xi32>
    %c15_i32 = arith.constant 15 : i32
    %22 = vector.broadcast %c15_i32 : i32 to vector<1x128xi32>
    %23 = arith.minsi %21, %22 : vector<1x128xi32>
    %c1_i32_8 = arith.constant 1 : i32
    %24 = vector.broadcast %c1_i32_8 : i32 to vector<1x128xi32>
    %25 = arith.addi %19, %24 : vector<1x128xi32>
    %c15_i32_9 = arith.constant 15 : i32
    %26 = vector.broadcast %c15_i32_9 : i32 to vector<1x128xi32>
    %27 = arith.minsi %25, %26 : vector<1x128xi32>
    %28 = tpu.iota {dimensions = array<i32: 0>} : vector<16x128xi32>
    %29 = tpu.iota {dimensions = array<i32: 0>} : vector<16x128xi32>
    %30 = vector.broadcast %18 : vector<1x128xi32> to vector<16x128xi32>
    %31 = arith.cmpi eq, %28, %30 : vector<16x128xi32>
    %cst_10 = arith.constant 1.000000e+00 : f32
    %32 = vector.broadcast %cst_10 : f32 to vector<1x128xf32>
    %33 = arith.subf %32, %16 : vector<1x128xf32>
    %cst_11 = arith.constant 0.000000e+00 : f32
    %34 = vector.shape_cast %33 : vector<1x128xf32> to vector<1x128xf32>
    %35 = vector.broadcast %34 : vector<1x128xf32> to vector<16x128xf32>
    %36 = vector.broadcast %cst_11 : f32 to vector<16x128xf32>
    %37 = arith.select %31, %35, %36 : vector<16x128xi1>, vector<16x128xf32>
    %38 = vector.broadcast %23 : vector<1x128xi32> to vector<16x128xi32>
    %39 = arith.cmpi eq, %28, %38 : vector<16x128xi32>
    %cst_12 = arith.constant 0.000000e+00 : f32
    %40 = vector.shape_cast %16 : vector<1x128xf32> to vector<1x128xf32>
    %41 = vector.broadcast %40 : vector<1x128xf32> to vector<16x128xf32>
    %42 = vector.broadcast %cst_12 : f32 to vector<16x128xf32>
    %43 = arith.select %39, %41, %42 : vector<16x128xi1>, vector<16x128xf32>
    %44 = arith.addf %37, %43 : vector<16x128xf32>
    %45 = vector.broadcast %19 : vector<1x128xi32> to vector<16x128xi32>
    %46 = arith.cmpi eq, %29, %45 : vector<16x128xi32>
    %cst_13 = arith.constant 1.000000e+00 : f32
    %47 = vector.broadcast %cst_13 : f32 to vector<1x128xf32>
    %48 = arith.subf %47, %17 : vector<1x128xf32>
    %cst_14 = arith.constant 0.000000e+00 : f32
    %49 = vector.shape_cast %48 : vector<1x128xf32> to vector<1x128xf32>
    %50 = vector.broadcast %49 : vector<1x128xf32> to vector<16x128xf32>
    %51 = vector.broadcast %cst_14 : f32 to vector<16x128xf32>
    %52 = arith.select %46, %50, %51 : vector<16x128xi1>, vector<16x128xf32>
    %53 = vector.broadcast %27 : vector<1x128xi32> to vector<16x128xi32>
    %54 = arith.cmpi eq, %29, %53 : vector<16x128xi32>
    %cst_15 = arith.constant 0.000000e+00 : f32
    %55 = vector.shape_cast %17 : vector<1x128xf32> to vector<1x128xf32>
    %56 = vector.broadcast %55 : vector<1x128xf32> to vector<16x128xf32>
    %57 = vector.broadcast %cst_15 : f32 to vector<16x128xf32>
    %58 = arith.select %54, %56, %57 : vector<16x128xi1>, vector<16x128xf32>
    %59 = arith.addf %52, %58 : vector<16x128xf32>
    %c0_16 = arith.constant 0 : index
    %c0_17 = arith.constant 0 : index
    %c0_18 = arith.constant 0 : index
    %60 = vector.load %arg4[%c0_16, %c0_17, %c0_18] : memref<1x64x16xf32, #tpu.memory_space<vmem>>, vector<1x64x16xf32>
    %61 = vector.shape_cast %60 : vector<1x64x16xf32> to vector<64x16xf32>
    %cst_19 = arith.constant dense<0.000000e+00> : vector<64x128xf32>
    %62 = tpu.matmul %61, %44, %cst_19 {dimension_numbers = #tpu.dot_dimension_numbers<[1], [0], [0], [1], [0, 0, 1, 1], [], []>} : vector<64x16xf32>, vector<16x128xf32>, vector<64x128xf32> -> vector<64x128xf32>
    %63 = vector.shape_cast %62 : vector<64x128xf32> to vector<4x16x128xf32>
    %64 = vector.shape_cast %59 : vector<16x128xf32> to vector<1x16x128xf32>
    %65 = vector.broadcast %64 : vector<1x16x128xf32> to vector<4x16x128xf32>
    %66 = arith.mulf %63, %65 : vector<4x16x128xf32>
    %cst_20 = arith.constant dense<0.000000e+00> : vector<4x128xf32>
    %67 = vector.multi_reduction <add>, %66, %cst_20 [1] : vector<4x16x128xf32> to vector<4x128xf32>
    %c0_21 = arith.constant 0 : index
    %c0_22 = arith.constant 0 : index
    %c0_23 = arith.constant 0 : index
    %68 = vector.load %arg5[%c0_21, %c0_22, %c0_23] : memref<1x4x128xf32, #tpu.memory_space<vmem>>, vector<1x4x128xf32>
    %69 = vector.shape_cast %68 : vector<1x4x128xf32> to vector<4x128xf32>
    %70 = vector.shape_cast %67 : vector<4x128xf32> to vector<1x4x128xf32>
    tpu.vector_store %arg5[%c0_21, %c0_22, %c0_23], %70 {strides = array<i32>} : memref<1x4x128xf32, #tpu.memory_space<vmem>>, vector<1x4x128xf32>,
    return
  }
  func.func @transform_0(%arg0: i32, %arg1: i32) -> (i32, i32, i32) {
    %c0_i32 = arith.constant 0 : i32
    %c0_i32_0 = arith.constant 0 : i32
    %c0_i32_1 = arith.constant 0 : i32
    return %arg0, %c0_i32, %c0_i32_0 : i32, i32, i32
  }
  func.func @transform_1(%arg0: i32, %arg1: i32) -> (i32, i32) {
    %c0_i32 = arith.constant 0 : i32
    %c0_i32_0 = arith.constant 0 : i32
    return %c0_i32, %arg1 : i32, i32
  }
  func.func @transform_2(%arg0: i32, %arg1: i32) -> (i32, i32, i32) {
    %c0_i32 = arith.constant 0 : i32
    %c0_i32_0 = arith.constant 0 : i32
    %c0_i32_1 = arith.constant 0 : i32
    return %arg0, %c0_i32, %c0_i32_0 : i32, i32, i32
  }
  func.func @transform_3(%arg0: i32, %arg1: i32) -> (i32, i32, i32) {
    %c0_i32 = arith.constant 0 : i32
    %c0_i32_0 = arith.constant 0 : i32
    return %arg0, %c0_i32, %arg1 : i32, i32, i32
  }
}

</mosaic_0001>

<bundles_post_ra>
// kernel: tpu_custom_call.1
= control target key start
LH: loop header
LB: loop body
LE: loop exit
PB: predicated region body
PF: predicated region fallthrough
CT: control target
= control target key end

     0   :  { %8 = vsyncpa [#allocation3], 0  ;;  %s1542_s0 = inlined_call_operand.vmem [shape: f32[2,2,23], index: 0, kind: input, shape index: {}]   ;;  %s1543_s1 = inlined_call_operand.vmem [shape: f32[23,128], index: 1, kind: input, shape index: {}]   ;;  %s1544_s2 = inlined_call_operand.vmem [shape: f32[2,64,16], index: 2, kind: input, shape index: {}]   ;;  %s1545_s3 = inlined_call_operand.hbm [shape: f32[2,4,128], index: 3, kind: output, shape index: {}]  }
   0x1   :  { %10 = vsyncpa [#allocation3 + $0x1], 0  ;;  %s1384_s12 = smov 0   ;;  %s1386_s13 = smov 0  }
   0x2   :  { %s1388_s14 = smov 0   ;;  %s1390_s15 = smov 0  }
   0x3   :  { %s1392_s16 = smov 0   ;;  %s1394_s17 = smov 0  }
   0x4 LB: > { %s1062_s18 = sadd.s32 4294967295, %s1358_s17   ;;  %s1063_s19 = sadd.s32 4294967294, %s1358_s17   ;;  %s1358_s17 = sphi %s1394_s17, %s16_s17   ;;  %s1354_s16 = sphi %s1392_s16, %s1552_s16   ;;  %s1350_s15 = sphi %s1390_s15, %s1551_s15   ;;  %s1346_s14 = sphi %s1388_s14, %s1550_s14   ;;  %s1342_s13 = sphi %s1386_s13, %s1549_s13   ;;  %s1338_s12 = sphi %s1384_s12, %s1548_s12  }
   0x5   : > { %s28_s20 = sadd.s32 1, %s1354_s16  ;;  %s115_s21 = sadd.s32 1, %s1346_s14 }
   0x6   : > { %p30_p0 = scmp.ge.s32.totalorder %s28_s20, 2  ;;  %p125_p1 = scmp.ne.s32.totalorder %s1346_s14, %s1342_s13 }
   0x7   : > { %p126_p2 = scmp.eq.s32.totalorder %s1062_s18, 1  ;;  %p131_p3 = scmp.ne.s32.totalorder %s1342_s13, %s1338_s12 }
   0x8   : > { %s1554_s20 = smov (%p30_p0, %s28_s20), 0  ;;  %p132_p5 = scmp.eq.s32.totalorder %s1063_s19, 1 }
   0x9   : > { %p1424_p4 = por %p126_p2, %p125_p1  ;;  %s110_s23 = ssub.s32 %s1354_s16, %s1554_s20 }
   0xa   : > { %p1067_p6 = scmp.ge.s32.totalorder %s1358_s17, 1  ;;  %p113_p7 = scmp.eq.s32.totalorder %s110_s23, 0 }
   0xb   : > { %p1431_p8 = por %p132_p5, %p131_p3  ;;  %p172_p9 = scmp.lt.s32.totalorder %s1358_s17, 3 }
   0xc   : > { %s1437_s25 = scalar_select %p113_p7, %s1346_s14, %s115_s21  }
   0xd   : > { %p173_p10 = pnand %p1067_p6, %p172_p9 }
   0xe   : > { %v218_v0 = vld [vmem:[%s1543_s1] sm:$0xff] (!%p173_p10)  ;;  %v219_v1 = vld [vmem:[%s1543_s1 + $0x8] sm:$0xff] (!%p173_p10)  ;;  %v220_v2 = vld [vmem:[%s1543_s1 + $0x10] sm:$0x7f] (!%p173_p10)  ;;  %v1360_v3 = vmov (!%p173_p10), 0.0|0.0   ;;  %vm225_vm0 = vcmask (!%p173_p10), 1046528   ;;  %v710_v39 = vlaneseq (!%p173_p10) }
   0xf   : > { %176 = sbr.rel (%p173_p10) target bundleno = 554 (0x22a), region = 32  ;;  %1195 = vmatprep.subr.bf16.mxu0 (!%p173_p10), %v1360_v3  ;;  %v230_v4 = vand.u32 (!%p173_p10), 4294901760, %v218_v0  ;;  %v233_v5 = vand.u32 (!%p173_p10), 4294901760, %v219_v1  ;;  %p204_p11 = scmp.lt.s32.totalorder (!%p173_p10), %s1350_s15, 1  ;;  %1189 = vmatprep.subr.bf16.mxu1 (!%p173_p10), %v1360_v3  ;;  %v227_v6 = vsel (!%p173_p10), %vm225_vm0, %v220_v2, 0  ;;  %vm1361_vm1 = vmmov (!%p173_p10), 0  }
  0x10   : > { %v1362_v7 = vmov (!%p173_p10), 0.0   ;;  %v236_v10 = vand.u32 (!%p173_p10), 4294901760, %v227_v6  ;;  %vm221_vm2 = vcmask (!%p173_p10), 187392   ;;  %vm774_vm3 = vcmask (!%p173_p10), 130048   ;;  %s201_s21 = sand.u32 (!%p173_p10), 1, %s1342_s13   ;;  %s1081_s26 = sshll.u32 (!%p173_p10), %s1350_s15, 6 }
  0x11   : > { %1143 = vmatprep.mubr.msk.f32.mxu0 (!%p173_p10), %vm1361_vm1, %v1362_v7  ;;  %1125 = vmatprep.mubr.msk.f32.mxu1 (!%p173_p10), %vm1361_vm1, %v1362_v7  ;;  %v309_v8 = vsub.f32 (!%p173_p10), %v218_v0, %v230_v4  ;;  %v316_v9 = vsub.f32 (!%p173_p10), %v219_v1, %v233_v5  ;;  %v1190_v11 = vpack.c.bf16 (!%p173_p10), %v233_v5, %v230_v4  ;;  %v711_v42 = vshrl.u32 (!%p173_p10), %v710_v39, 7  ;;  %s1068_s23 = sshll.u32 (!%p173_p10), %s201_s21, 2  ;;  %s1495_s4 = scalar_lea.hbm (!%p173_p10), %s1545_s3, %s1081_s26 }
  0x12   : > { %v323_v15 = vsub.f32 (!%p173_p10), %v227_v6, %v236_v10  ;;  %vm944_vm13 = vcmask (!%p173_p10), 1041409   ;;  %vm946_vm14 = vcmask (!%p173_p10), 1042434   ;;  %s203_s27 = scalar_lea.vmem (!%p173_p10), [#allocation2], %s1068_s23  ;;  %vm948_vm15 = vcmask (!%p173_p10), 1043459  }
  0x13   : > { %v1196_v12 = vpack.c.bf16 (!%p173_p10), %v316_v9, %v309_v8  ;;  %1191 = vmatpush3.bf16.msra.mxu1 (!%p173_p10), %v1190_v11  ;;  %v310_v13 = vand.u32 (!%p173_p10), 4294901760, %v309_v8  ;;  %v317_v14 = vand.u32 (!%p173_p10), 4294901760, %v316_v9  ;;  %v715_v46 = vsub.s32 (!%p173_p10), 0, %v711_v42  ;;  %s967_s28 = sshll.u32 (!%p173_p10), %s203_s27, 4  ;;  %s1497_s28 = int_to_ptr.vmem [resolvable:$true] %s967_s28 }
  0x14   : > { %1123 = vmatprep.subr.mxu1 (!%p173_p10), %v1362_v7  ;;  %v324_v24 = vand.u32 (!%p173_p10), 4294901760, %v323_v15  ;;  %v742_v49 = vsub.s32 (!%p173_p10), 1, %v711_v42  ;;  %v712_v50 = vadd.s32 (!%p173_p10), 8, %v711_v42 }
  0x15   : > { %1197 = vmatpush3.bf16.msra.mxu0 (!%p173_p10), %v1196_v12  ;;  %v311_v18 = vsub.f32 (!%p173_p10), %v309_v8, %v310_v13  ;;  %v318_v19 = vsub.f32 (!%p173_p10), %v316_v9, %v317_v14  ;;  %v1202_v30 = vpack.c.bf16 (!%p173_p10), %v317_v14, %v310_v13 }
  0x16   : > { %s1454_s5 = scalar_select %p204_p11, %s1350_s15, 1  ;;  %1141 = vmatprep.subr.mxu0 %v1362_v7  ;;  %v325_v28 = vsub.f32 %v323_v15, %v324_v24 }
  0x17   : > { %1124 = vmatpush3.msra.mxu1 %v236_v10  ;;  %v312_v22 = vand.u32 4294901760, %v311_v18  ;;  %v319_v23 = vand.u32 4294901760, %v318_v19  ;;  %s1363_s15 = smov [#allocation2]  }
  0x18   : > { %s1069_s6 = sshll.u32 %s1454_s5, 1  ;;  %1192 = vmatprep.subr.bf16.mxu1 %v1360_v3  ;;  %v326_v31 = vand.u32 4294901760, %v325_v28  ;;  %s1084_s10 = sshll.u32 %s1454_s5, 6 }
  0x19   : > { %s207_s9 = scalar_lea.vmem %s1542_s0, %s1069_s6  ;;  %1142 = vmatpush3.msra.mxu0 %v323_v15  ;;  %v1193_v27 = vpack.c.bf16 %v319_v23, %v312_v22  ;;  %s1472_s19 = scalar_lea.vmem %s1544_s2, %s1084_s10 }
  0x1a   : > { %v217_v16 = vld [vmem:[%s207_s9] sm:$0x3]  ;;  %1198 = vmatprep.subr.bf16.mxu0 %v1360_v3  ;;  %v769_v12 = vld [vmem:[%s1472_s19 + $0x18] sm:$0xff]  ;;  %v771_v14 = vld [vmem:[%s1472_s19 + $0x28] sm:$0xff]  ;;  %s953_s5 = scalar_lea.sflag [#allocation3], %s201_s21  ;;  %s1280_s6 = scalar_lea.vmem %s1497_s28, 64 }
  0x1b   : > { %v223_v17 = vsel %vm221_vm2, %v217_v16, 0  ;;  %v766_v32 = vld [vmem:[%s1472_s19] sm:$0xff]  ;;  %v772_v15 = vld [vmem:[%s1472_s19 + $0x30] sm:$0xff]  ;;  %v773_v16 = vld [vmem:[%s1472_s19 + $0x38] sm:$0xff]  ;;  %p1281_p12 = scmp.ne.s32.totalorder %s1497_s28, %s1280_s6  ;;  %s1284_s7 = sshll.u32 %s1363_s15, 4  ;;  %s1285_s7 = int_to_ptr.vmem [resolvable:$false] %s1284_s7 }
  0x1c   : > { %v297_v20 = vand.u32 4294901760, %v223_v17  ;;  %v770_v13 = vld [vmem:[%s1472_s19 + $0x20] sm:$0xff]  ;;  %s1286_s8 = scalar_lea.vmem %s1285_s7, 128  ;;  %p1287_p1 = scmp.lt.s32.totalorder %s1497_s28, %s1285_s7 }
  0x1d   : > { %p1282_p13 = pnand %p1281_p12, %p1424_p4  ;;  %p1288_p2 = scmp.lt.s32.totalorder %s1286_s8, %s1280_s6 }
  0x1e   : > { %v298_v21 = vsub.f32 %v223_v17, %v297_v20 }
  0x1f   : > { %p1283_p0 = pneg %p1282_p13  ;;  %p1289_p3 = por %p1288_p2, %p1287_p1 }
  0x20   : > { %1144 = vmatmul.mubr.f32.vlgmr.msra.gmra.mrb[0].mxu0 %v298_v21  ;;  %v299_v25 = vand.u32 4294901760, %v298_v21 }
  0x21   : > { %1200 = vmatpush3.bf16.msra.mxu0 %v1190_v11  ;;  %1152 = vmatprep.mubr.msk.f32.mxu0 %vm1361_vm1, %v1362_v7  ;;  %p1290_p5 = pnand %p1289_p3, %p1283_p0 }
  0x22   : > { %1150 = vmatprep.subr.mxu0 %v1362_v7  ;;  %v300_v26 = vsub.f32 %v298_v21, %v299_v25 }
  0x24   : > { %v301_v29 = vand.u32 4294901760, %v300_v26 }
  0x25   : > { %1151 = vmatpush3.msra.mxu0 %v236_v10 }
  0x26   : > { %1126 = vmatmul.mubr.f32.vlgmr.msra.gmra.mrb[0].mxu1 %v301_v29  ;;  %1201 = vmatprep.subr.bf16.mxu0 %v1360_v3 }
  0x27   : > { %1194 = vmatpush3.bf16.msra.mxu1 %v1193_v27  ;;  %1134 = vmatprep.mubr.msk.f32.mxu1 %vm1361_vm1, %v1362_v7 }
  0x28   : > { %1153 = vmatmul.mubr.f32.vlgmr.msra.gmra.mrb[0].mxu0 %v299_v25  ;;  %1132 = vmatprep.subr.mxu1 %v1362_v7 }
  0x29   : > { %1203 = vmatpush3.bf16.msra.mxu0 %v1202_v30  ;;  %1161 = vmatprep.mubr.msk.f32.mxu0 %vm1361_vm1, %v1362_v7 }
  0x2a   : > { %1159 = vmatprep.subr.mxu0 %v1362_v7 }
  0x2b   : > { %1133 = vmatpush3.msra.mxu1 %v326_v31 }
  0x2d   : > { %1160 = vmatpush3.msra.mxu0 %v324_v24 }
  0x2e   : > { %1135 = vmatmul.mubr.f32.vlgmr.msra.gmra.mrb[0].mxu1 %v297_v20  ;;  %1204 = vmatprep.subr.bf16.mxu0 %v1360_v3 }
  0x2f   : > { %1177 = vmatprep.mubr.msk.f32.mxu1 %vm774_vm3, %v766_v32 }
  0x30   : > { %1162 = vmatmul.mubr.f32.vlgmr.msra.gmra.mrb[0].mxu0 %v297_v20 }
  0x31   : > { %1206 = vmatpush3.bf16.msra.mxu0 %v1190_v11  ;;  %1170 = vmatprep.mubr.msk.f32.mxu0 %vm1361_vm1, %v1362_v7  ;;  %v768_v11 = vld [vmem:[%s1472_s19 + $0x10] sm:$0xff] }
  0x32   : > { %1168 = vmatprep.subr.mxu0 %v1362_v7 }
  0x35   : > { %1169 = vmatpush3.msra.mxu0 %v236_v10  ;;  %v767_v10 = vld [vmem:[%s1472_s19 + $0x8] sm:$0xff] }
  0x38   : > { %1171 = vmatmul.mubr.f32.vlgmr.msra.gmra.mrb[0].mxu0 %v297_v20 }
 0x101   : > { %v389_v33 = vpop.f32.mrb[0].mxu1 }
 0x102   : > { %v1136_v34 = vpop.f32.mrb[1].mxu1 }
 0x10b   : > { %v697_v35 = vpop.f32.mrb[0].mxu0 }
 0x10c   : > { %v1211_v36 = vadd.f32 %v697_v35, %v389_v33  ;;  %v1172_v37 = vpop.f32.mrb[1].mxu0 }
 0x10e   : > { %v701_v38 = vmax.f32 %v1211_v36, 0.0 }
 0x110   : > { %v702_v40 = vmin.f32 %v701_v38, 1.0 }
 0x112   : > { %v703_v41 = vmul.f32 15.0, %v702_v40 }
 0x114   : > { %v704_v43 = vfloor.f32 %v703_v41 }
 0x116   : > { %v705_v44 = vsub.f32 %v703_v41, %v704_v43  ;;  %v1220_v45 = vtrunc.f32 %v704_v43 }
 0x118   : > { %v1221_v47 = vcvt.f32.s32 %v1220_v45  ;;  %v719_v48 = vsub.f32 1.0, %v705_v44  ;;  %v735_v58 = vrot.slane %v705_v44, %v715_v46  ;;  %v761_v61 = vrot.slane %v705_v44, %v742_v49 }
 0x11a   : > { %v707_v51 = vadd.s32 1, %v1221_v47  ;;  %v743_v52 = vrot.slane %v1221_v47, %v742_v49  ;;  %v749_v53 = vrot.slane %v719_v48, %v742_v49  ;;  %v716_v54 = vrot.slane %v1221_v47, %v715_v46 }
 0x11b   : > { %v723_v55 = vrot.slane %v719_v48, %v715_v46 }
 0x11c   : > { %vm708_vm4 = vcmp.lt.s32.totalorder %v707_v51, 15  ;;  %vm717_vm5 = vcmp.eq.s32.totalorder %v711_v42, %v716_v54  ;;  %vm718_vm6 = vcmp.eq.s32.totalorder %v712_v50, %v716_v54  ;;  %vm745_vm7 = vcmp.eq.s32.totalorder %v712_v50, %v743_v52 }
 0x11d   : > { %v709_v56 = vsel %vm708_vm4, %v707_v51, 15  ;;  %v751_v57 = vsel %vm745_vm7, %v749_v53, 0.0  ;;  %vm744_vm8 = vcmp.eq.s32.totalorder %v711_v42, %v743_v52  ;;  %v724_v62 = vsel %vm717_vm5, %v723_v55, 0.0 }
 0x11e   : > { %v729_v59 = vrot.slane %v709_v56, %v715_v46  ;;  %v755_v60 = vrot.slane %v709_v56, %v742_v49  ;;  %v725_v63 = vsel %vm718_vm6, %v723_v55, 0.0  ;;  %v750_v0 = vsel %vm744_vm8, %v749_v53, 0.0 }
 0x120   : > { %vm730_vm9 = vcmp.eq.s32.totalorder %v711_v42, %v729_v59  ;;  %vm731_vm10 = vcmp.eq.s32.totalorder %v712_v50, %v729_v59  ;;  %vm757_vm11 = vcmp.eq.s32.totalorder %v712_v50, %v755_v60  ;;  %vm756_vm12 = vcmp.eq.s32.totalorder %v711_v42, %v755_v60 }
 0x121   : > { %v736_v1 = vsel %vm730_vm9, %v735_v58, 0.0  ;;  %v737_v2 = vsel %vm731_vm10, %v735_v58, 0.0  ;;  %v763_v3 = vsel %vm757_vm11, %v761_v61, 0.0  ;;  %v762_v4 = vsel %vm756_vm12, %v761_v61, 0.0 }
 0x122   : > { %v738_v5 = vadd.f32 %v736_v1, %v724_v62  ;;  %v739_v6 = vadd.f32 %v737_v2, %v725_v63  ;;  %v765_v7 = vadd.f32 %v763_v3, %v751_v57  ;;  %v764_v8 = vadd.f32 %v762_v4, %v750_v0 }
 0x124   : > { %v1207_v9 = vpack.c.bf16 %v739_v6, %v738_v5 }
 0x126   : > { %1208 = vmatprep.subr.bf16.mxu1 %v1207_v9 }
 0x127   : > { %1210 = vmatpush3.bf16.msra.mxu1 %v1207_v9 }
 0x12a   : > { %1178 = vmatmul.mubr.msk.f32.vlgmr.msra.gmra.mrb[2].mxu1 %vm774_vm3, %v767_v10 }
 0x12b   : > { %1180 = vmatprep.mubr.msk.f32.mxu1 %vm774_vm3, %v768_v11 }
 0x12e   : > { %1181 = vmatmul.mubr.msk.f32.gmra.mrb[4].mxu1 %vm774_vm3, %v769_v12 }
 0x12f   : > { %1183 = vmatprep.mubr.msk.f32.mxu1 %vm774_vm3, %v770_v13 }
 0x132   : > { %1184 = vmatmul.mubr.msk.f32.gmra.mrb[6].mxu1 %vm774_vm3, %v771_v14 }
 0x133   : > { %1186 = vmatprep.mubr.msk.f32.mxu1 %vm774_vm3, %v772_v15 }
 0x136   : > { %1187 = vmatmul.mubr.msk.f32.gmra.mrb[8].mxu1 %vm774_vm3, %v773_v16 }
 0x1fd   : > { %v1179_v17 = vpop.f32.mrb[2].mxu1 }
 0x1fe   : > { %v905_v18 = vmul.f32 %v1179_v17, %v765_v7  ;;  %v865_v19 = vpop.f32.mrb[3].mxu1 }
 0x1ff   : > { %v904_v20 = vmul.f32 %v865_v19, %v764_v8 }
 0x201   : > { %v912_v21 = vadd.f32 %v905_v18, %v904_v20  ;;  %v1182_v22 = vpop.f32.mrb[4].mxu1 }
 0x202   : > { %v907_v23 = vmul.f32 %v1182_v22, %v765_v7  ;;  %v875_v24 = vpop.f32.mrb[5].mxu1 }
 0x203   : > { %v913_v25 = vrot.slane %v912_v21, 4  ;;  %v906_v26 = vmul.f32 %v875_v24, %v764_v8 }
 0x205   : > { %v914_v27 = vadd.f32 %v913_v25, %v912_v21  ;;  %v919_v28 = vadd.f32 %v907_v23, %v906_v26  ;;  %v1185_v29 = vpop.f32.mrb[6].mxu1 }
 0x206   : > { %v909_v30 = vmul.f32 %v1185_v29, %v765_v7  ;;  %v885_v31 = vpop.f32.mrb[7].mxu1 }
 0x207   : > { %v915_v32 = vrot.slane %v914_v27, 2  ;;  %v920_v33 = vrot.slane %v919_v28, 4  ;;  %v908_v34 = vmul.f32 %v885_v31, %v764_v8 }
 0x209   : > { %v916_v35 = vadd.f32 %v915_v32, %v914_v27  ;;  %v921_v36 = vadd.f32 %v920_v33, %v919_v28  ;;  %v926_v37 = vadd.f32 %v909_v30, %v908_v34  ;;  %v1188_v38 = vpop.f32.mrb[8].mxu1 }
 0x20a   : > { %v911_v39 = vmul.f32 %v1188_v38, %v765_v7  ;;  %v895_v40 = vpop.f32.mrb[9].mxu1 }
 0x20b   : > { %v922_v41 = vrot.slane %v921_v36, 2  ;;  %v927_v42 = vrot.slane %v926_v37, 4  ;;  %v910_v43 = vmul.f32 %v895_v40, %v764_v8  ;;  %v917_v44 = vrot.slane %v916_v35, 1 }
 0x20d   : > { %v923_v45 = vadd.f32 %v922_v41, %v921_v36  ;;  %v928_v46 = vadd.f32 %v927_v42, %v926_v37  ;;  %v933_v47 = vadd.f32 %v911_v39, %v910_v43  ;;  %v918_v51 = vadd.f32 %v917_v44, %v916_v35 }
 0x20f   : > { %v924_v48 = vrot.slane %v923_v45, 1  ;;  %v929_v49 = vrot.slane %v928_v46, 2  ;;  %v934_v50 = vrot.slane %v933_v47, 4 }
 0x211   : > { %v925_v52 = vadd.f32 %v924_v48, %v923_v45  ;;  %v930_v53 = vadd.f32 %v929_v49, %v928_v46  ;;  %v935_v54 = vadd.f32 %v934_v50, %v933_v47 }
 0x213   : > { %v931_v55 = vrot.slane %v930_v53, 1  ;;  %v936_v56 = vrot.slane %v935_v54, 2  ;;  %v945_v57 = vsel %vm944_vm13, %v925_v52, %v918_v51 }
 0x215   : > { %v932_v58 = vadd.f32 %v931_v55, %v930_v53  ;;  %v937_v59 = vadd.f32 %v936_v56, %v935_v54 }
 0x217   : > { %v938_v60 = vrot.slane %v937_v59, 1  ;;  %v947_v61 = vsel %vm946_vm14, %v932_v58, %v945_v57 }
 0x219   : > { %v939_v62 = vadd.f32 %v938_v60, %v937_v59 }
 0x21b   : > { %v949_v63 = vsel %vm948_vm15, %v939_v62, %v947_v61 }
 0x21c   : > { %951 = vst [vmem:[%s203_s27] sm:$0xf] %v949_v63 }
 0x21d   : > { %1293 = shalt.err (!%p1290_p5)
}
 0x21e   : > { %s1294_s9 = scalar_lea.hbm %s1495_s4, 64  ;;  %s1298_s18 = scalar_lea.hbm %s1545_s3, 128 }
 0x21f   : > { %p1295_p6 = scmp.ne.s32.totalorder %s1495_s4, %s1294_s9  ;;  %p1299_p10 = scmp.lt.u32.totalorder %s1495_s4, %s1545_s3 }
 0x220   : > { %p1300_p11 = scmp.lt.u32.totalorder %s1298_s18, %s1294_s9  ;;  %p1302_p13 = scmp.lt.u32.totalorder %s1294_s9, %s1495_s4 }
 0x221   : > { %p1296_p7 = pnand %p1295_p6, %p1424_p4 }
 0x222   : > { %p1301_p12 = por %p1300_p11, %p1299_p10 }
 0x223   : > { %p1297_p9 = pneg %p1296_p7 }
 0x224   : > { %p1303_p0 = por %p1302_p13, %p1301_p12 }
 0x226   : > { %p1304_p1 = pnand %p1303_p0, %p1297_p9 }
 0x228   : > { %1307 = shalt.err (!%p1304_p1)
}
 0x229   : > { %1222 = dma.vmem_to_hbm [thread:$0]  (%p1424_p4), %s1497_s28, 64, %s1495_s4, %s953_s5  }
 0x22a PF: > { %p1228_p2 = scmp.ge.s32.totalorder %s1358_s17, 2  ;;  %s979_s23 = sand.u32 1, %s1338_s12  }
 0x22b   : > { %s980_s26 = scalar_lea.sflag [#allocation3], %s979_s23 }
 0x22c   : > { %p1225_p3 = pnand %p1228_p2, %p1431_p8 }
 0x22e   : > { %1333 = dma.done.wait (!%p1225_p3), %s980_s26, 64  }
 0x22f   : > { %1335 = vsyncadd (!%p1225_p3), %s980_s26, 4294967232  ;;  %s16_s17 = sadd.s32 1, %s1358_s17   ;;  %s1548_s12 = smov %s1342_s13 }
 0x230   : > { %p13_p5 = scmp.ge.s32.totalorder %s16_s17, 4   ;;  %s1549_s13 = smov %s1346_s14 }
 0x231   : > { %s1550_s14 = smov %s1437_s25  ;;  %s1551_s15 = smov %s1354_s16 }
 0x232   : > { %s1552_s16 = smov %s1554_s20  ;;  %15 = sbr.rel (!%p13_p5) target bundleno = 4 (0x4), region = 73 }
 0x239   :  { %985 = vsyncpa [#allocation3], 1 }
 0x23a   :  { %987 = vsyncpa [#allocation3 + $0x1], 1 }

</bundles_post_ra>
